<compile_context>
chip_gen: v7x
topology: tpu7x:2x2x1
jax: 0.10.0
libtpu: 0.0.40
codegen_flags: <defaults>
</compile_context>

<pallas_src>
import functools

import jax
import jax.numpy as jnp
from jax.experimental import pallas as pl
from jax.experimental.pallas import tpu as pltpu

_LANES = 128
_SUBLANES = 8


def _cdiv(a, b):
    return -(-a // b)


def _tpu_config():
    """Returns (num_parallel_cores, max_tile_rows) tuned per TPU generation."""
    try:
        kind = jax.devices()[0].device_kind.lower()
    except Exception:
        return 1, 2048
    if "v7" in kind:
        return 2, 4096          # 2 TCs/chip, 3.2 TB/s HBM -> bigger blocks
    if "v5e" in kind or "v6e" in kind or "lite" in kind:
        return 1, 2048          # single TensorCore: avoid the serial dup loop
    return 2, 2048              # other multi-core chips (v4 / v5p / ...)


def _masked_terms(pred, gt, mask, order):
    """Per-element (err**order where mask else 0, mask as int32)."""
    inv_gt = 1.0 / jnp.where(mask, gt, 1.0)   # safe reciprocal on masked slots
    err = jnp.abs(pred - inv_gt)
    if order == 1:
        powed = err
    elif order == 2:
        powed = err * err
    else:
        powed = err ** order
    return jnp.where(mask, powed, 0.0), mask.astype(jnp.int32)


def _disparity_loss_kernel(pred_ref, gt_ref, sum_ref, cnt_ref,
                           acc_sum, acc_cnt, *,
                           rows_total, n_full_tiles, tiles_per_core,
                           tile_rows, order):
    c = pl.program_id(0)   # parallel (core) axis
    i = pl.program_id(1)   # reduction axis over row tiles

    @pl.when(i == 0)
    def _():
        acc_sum[...] = jnp.zeros_like(acc_sum)
        acc_cnt[...] = jnp.zeros_like(acc_cnt)

    pred = pred_ref[...].astype(jnp.float32)
    gt = gt_ref[...].astype(jnp.float32)
    tile_idx = c * tiles_per_core + i   # UNCLAMPED tile index

    def accumulate(mask):
        vals, cnts = _masked_terms(pred, gt, mask, order)
        # VPU-only reduction of the (tile_rows, 128) tile down to the
        # (8, 128) vreg-shaped accumulators; no cross-lane work per step and
        # no full-tile VMEM read-modify-write.
        acc_sum[...] += jnp.sum(vals.reshape(-1, _SUBLANES, _LANES), axis=0)
        acc_cnt[...] += jnp.sum(cnts.reshape(-1, _SUBLANES, _LANES), axis=0)

    # Fast path: every row of an interior (full) tile is in-bounds ->
    # no index math at all.
    @pl.when(tile_idx < n_full_tiles)
    def _():
        accumulate(gt > 0.0)

    # Slow path: ragged last tile (edge-block garbage rows) and clamped
    # overflow tiles.  Row-granularity validity mask (int32-safe up to 2^31
    # rows; the <128*sublane element remainder never reaches the kernel).
    @pl.when(tile_idx >= n_full_tiles)
    def _():
        row0 = tile_idx * tile_rows
        local_row = jax.lax.broadcasted_iota(jnp.int32, gt.shape, 0)
        row_ok = (row0 + local_row) < rows_total
        accumulate(row_ok & (gt > 0.0))

    @pl.when(i == pl.num_programs(1) - 1)
    def _():
        # Single cross-lane (XLU) reduce per core.
        sum_ref[...] = jnp.zeros_like(sum_ref) + jnp.sum(acc_sum[...])
        cnt_ref[...] = jnp.zeros_like(cnt_ref) + jnp.sum(acc_cnt[...])


def disparity_loss(prediction, gt, order=2):
    """Pallas equivalent of Disparity_Loss(order).forward(prediction, gt)."""
    assert prediction.shape == gt.shape
    total_n = int(prediction.size)

    pred_flat = jnp.ravel(prediction)
    gt_flat = jnp.ravel(gt)

    # Sublane packing multiple for the native dtype (the f32 cast is per-tile,
    # in-kernel, so bf16 inputs stream at half the HBM bytes).
    itemsize = jnp.dtype(prediction.dtype).itemsize
    sublane_mult = {4: _SUBLANES, 2: 16, 1: 32}.get(itemsize, _SUBLANES)

    num_cores, max_tile_rows = _tpu_config()

    # The kernel consumes the leading rows_aligned*128 elements (rows_aligned
    # a multiple of the sublane packing -> no host-side pad copy, and no block
    # ever exceeds the array).  The small remainder is handled right here.
    rows_aligned = (total_n // (_LANES * sublane_mult)) * sublane_mult
    main_n = rows_aligned * _LANES

    if main_n < total_n:
        # Remainder (< sublane_mult*128 elements): plain jnp, negligible work,
        # avoids the O(N) jnp.pad copy of the previous version.
        pred_t = pred_flat[main_n:].astype(jnp.float32)
        gt_t = gt_flat[main_n:].astype(jnp.float32)
        vals_t, cnts_t = _masked_terms(pred_t, gt_t, gt_t > 0.0, order)
        tail_sum = jnp.sum(vals_t)
        tail_cnt = jnp.sum(cnts_t)
    else:
        tail_sum = jnp.float32(0.0)
        tail_cnt = jnp.int32(0)

    if rows_aligned == 0:
        # Tiny input: everything was handled by the remainder path.
        return tail_sum / tail_cnt.astype(jnp.float32)

    pred2d = pred_flat[:main_n].reshape(rows_aligned, _LANES)
    gt2d = gt_flat[:main_n].reshape(rows_aligned, _LANES)

    tile_rows = min(max_tile_rows, rows_aligned)
    num_tiles = _cdiv(rows_aligned, tile_rows)
    n_full_tiles = rows_aligned // tile_rows
    tiles_per_core = _cdiv(num_tiles, num_cores)
    last_tile = num_tiles - 1

    kernel = functools.partial(
        _disparity_loss_kernel,
        rows_total=rows_aligned,
        n_full_tiles=n_full_tiles,
        tiles_per_core=tiles_per_core,
        tile_rows=tile_rows,
        order=order,
    )

    def in_map(c, i):
        # Clamp so the DMA never walks past the array; the kernel's slow path
        # masks duplicated / ragged rows via the UNCLAMPED tile index.
        return (jnp.minimum(c * tiles_per_core + i, last_tile), 0)

    sums, cnts = pl.pallas_call(
        kernel,
        out_shape=(
            jax.ShapeDtypeStruct((num_cores, 1, 1), jnp.float32),
            jax.ShapeDtypeStruct((num_cores, 1, 1), jnp.int32),
        ),
        grid_spec=pltpu.PrefetchScalarGridSpec(
            num_scalar_prefetch=0,
            grid=(num_cores, tiles_per_core),
            in_specs=[
                pl.BlockSpec((tile_rows, _LANES), in_map),
                pl.BlockSpec((tile_rows, _LANES), in_map),
            ],
            out_specs=[
                pl.BlockSpec((1, 1, 1), lambda c, i: (c, 0, 0)),
                pl.BlockSpec((1, 1, 1), lambda c, i: (c, 0, 0)),
            ],
            scratch_shapes=[
                pltpu.VMEM((_SUBLANES, _LANES), jnp.float32),
                pltpu.VMEM((_SUBLANES, _LANES), jnp.int32),
            ],
        ),
        compiler_params=pltpu.CompilerParams(
            dimension_semantics=("parallel", "arbitrary"),
        ),
    )(pred2d, gt2d)

    total_sum = jnp.sum(sums) + tail_sum
    total_cnt = jnp.sum(cnts) + tail_cnt
    # Mean over the masked (gt > 0) elements only; NaN when no element is
    # valid, matching torch.mean over an empty boolean selection.
    return total_sum / total_cnt.astype(jnp.float32)


def _reference(prediction, gt, order=2):
    mask = gt > 0
    inv = 1.0 / jnp.where(mask, gt.astype(jnp.float32), 1.0)
    err = jnp.abs(prediction.astype(jnp.float32) - inv)
    vals = jnp.where(mask, err ** order, 0.0)
    return jnp.sum(vals) / jnp.sum(mask.astype(jnp.float32))


if __name__ == "__main__":
    key = jax.random.PRNGKey(0)
    k1, k2, k3, k4, k5, k6 = jax.random.split(key, 6)

    # NCHW inputs like the PyTorch module expects.
    shape = (2, 4, 16, 16)
    prediction = jax.random.normal(k1, shape, dtype=jnp.float32)
    # gt: well-conditioned positive magnitudes, ~30% flipped non-positive so
    # the gt>0 mask is exercised.
    mag = jax.random.uniform(k2, shape, dtype=jnp.float32, minval=0.5, maxval=5.0)
    sign = jnp.where(jax.random.uniform(k3, shape) < 0.3, -1.0, 1.0)
    gt = mag * sign

    result = jax.block_until_ready(disparity_loss(prediction, gt, order=2))
    ref = _reference(prediction, gt, order=2)
    assert jnp.allclose(result, ref, rtol=1e-4, atol=1e-6), (result, ref)

    # Ragged flat size: exercises the wrapper-side remainder path (no pad copy).
    shape2 = (1061,)
    prediction2 = jax.random.normal(k4, shape2, dtype=jnp.float32)
    mag2 = jax.random.uniform(k5, shape2, dtype=jnp.float32, minval=0.5, maxval=5.0)
    sign2 = jnp.where(jax.random.uniform(k6, shape2) < 0.3, -1.0, 1.0)
    gt2 = mag2 * sign2

    result2 = jax.block_until_ready(disparity_loss(prediction2, gt2, order=2))
    ref2 = _reference(prediction2, gt2, order=2)
    assert jnp.allclose(result2, ref2, rtol=1e-4, atol=1e-6), (result2, ref2)

    print("KERNEL_OK")
</pallas_src>

<mosaic_0001>
module attributes {stable_mosaic.version = 11 : i64} {
  func.func @_disparity_loss_kernel(%arg0: i32, %arg1: i32, %arg2: memref<16x128xf32, #tpu.memory_space<vmem>>, %arg3: memref<16x128xf32, #tpu.memory_space<vmem>>, %arg4: memref<1x1x1xf32, #tpu.memory_space<vmem>>, %arg5: memref<1x1x1xi32, #tpu.memory_space<vmem>>, %arg6: memref<8x128xf32, #tpu.memory_space<vmem>>, %arg7: memref<8x128xi32, #tpu.memory_space<vmem>>) attributes {dimension_semantics = [#tpu.dimension_semantics<parallel>, #tpu.dimension_semantics<arbitrary>], iteration_bounds = array<i64: 2, 1>, scalar_prefetch = 0 : i64, scratch_operands = 2 : i64, tpu.core_type = #tpu.core_type<tc>, window_params = [{transform_indices = @transform_0, window_bounds = array<i64: 16, 128>}, {transform_indices = @transform_1, window_bounds = array<i64: 16, 128>}, {transform_indices = @transform_2, window_bounds = array<i64: 1, 1, 1>}, {transform_indices = @transform_3, window_bounds = array<i64: 1, 1, 1>}]} {
    %c0_i32 = arith.constant 0 : i32
    %0 = arith.cmpi eq, %arg1, %c0_i32 : i32
    %1 = arith.extui %0 : i1 to i32
    %c0_i32_0 = arith.constant 0 : i32
    %2 = arith.cmpi ne, %1, %c0_i32_0 : i32
    scf.if %2 {
      %cst = arith.constant 0.000000e+00 : f32
      %16 = vector.broadcast %cst : f32 to vector<8x128xf32>
      %c0_10 = arith.constant 0 : index
      %c0_11 = arith.constant 0 : index
      %17 = vector.load %arg6[%c0_10, %c0_11] : memref<8x128xf32, #tpu.memory_space<vmem>>, vector<8x128xf32>
      tpu.vector_store %arg6[%c0_10, %c0_11], %16 {strides = array<i32>} : memref<8x128xf32, #tpu.memory_space<vmem>>, vector<8x128xf32>,
      %c0_i32_12 = arith.constant 0 : i32
      %18 = vector.broadcast %c0_i32_12 : i32 to vector<8x128xi32>
      %c0_13 = arith.constant 0 : index
      %c0_14 = arith.constant 0 : index
      %19 = vector.load %arg7[%c0_13, %c0_14] : memref<8x128xi32, #tpu.memory_space<vmem>>, vector<8x128xi32>
      tpu.vector_store %arg7[%c0_13, %c0_14], %18 {strides = array<i32>} : memref<8x128xi32, #tpu.memory_space<vmem>>, vector<8x128xi32>,
    } else {
    }
    %c0 = arith.constant 0 : index
    %c0_1 = arith.constant 0 : index
    %3 = vector.load %arg2[%c0, %c0_1] : memref<16x128xf32, #tpu.memory_space<vmem>>, vector<16x128xf32>
    %c0_2 = arith.constant 0 : index
    %c0_3 = arith.constant 0 : index
    %4 = vector.load %arg3[%c0_2, %c0_3] : memref<16x128xf32, #tpu.memory_space<vmem>>, vector<16x128xf32>
    %c1_i32 = arith.constant 1 : i32
    %5 = arith.muli %arg0, %c1_i32 : i32
    %6 = arith.addi %5, %arg1 : i32
    %c1_i32_4 = arith.constant 1 : i32
    %7 = arith.cmpi slt, %6, %c1_i32_4 : i32
    %8 = arith.extui %7 : i1 to i32
    %c0_i32_5 = arith.constant 0 : i32
    %9 = arith.cmpi ne, %8, %c0_i32_5 : i32
    scf.if %9 {
      %cst = arith.constant 0.000000e+00 : f32
      %16 = vector.broadcast %cst : f32 to vector<16x128xf32>
      %17 = arith.cmpf ogt, %4, %16 : vector<16x128xf32>
      %cst_10 = arith.constant 1.000000e+00 : f32
      %18 = vector.broadcast %cst_10 : f32 to vector<16x128xf32>
      %19 = arith.select %17, %4, %18 : vector<16x128xi1>, vector<16x128xf32>
      %cst_11 = arith.constant 1.000000e+00 : f32
      %20 = vector.broadcast %cst_11 : f32 to vector<16x128xf32>
      %21 = arith.divf %20, %19 : vector<16x128xf32>
      %22 = arith.subf %3, %21 : vector<16x128xf32>
      %23 = math.absf %22 : vector<16x128xf32>
      %24 = arith.mulf %23, %23 : vector<16x128xf32>
      %cst_12 = arith.constant 0.000000e+00 : f32
      %25 = vector.broadcast %cst_12 : f32 to vector<16x128xf32>
      %26 = arith.select %17, %24, %25 : vector<16x128xi1>, vector<16x128xf32>
      %27 = arith.extui %17 : vector<16x128xi1> to vector<16x128xi32>
      %c0_13 = arith.constant 0 : index
      %c0_14 = arith.constant 0 : index
      %28 = vector.load %arg6[%c0_13, %c0_14] : memref<8x128xf32, #tpu.memory_space<vmem>>, vector<8x128xf32>
      %29 = vector.shape_cast %26 : vector<16x128xf32> to vector<2x8x128xf32>
      %cst_15 = arith.constant dense<0.000000e+00> : vector<8x128xf32>
      %30 = vector.multi_reduction <add>, %29, %cst_15 [0] : vector<2x8x128xf32> to vector<8x128xf32>
      %31 = arith.addf %28, %30 : vector<8x128xf32>
      %c0_16 = arith.constant 0 : index
      %c0_17 = arith.constant 0 : index
      %32 = vector.load %arg6[%c0_16, %c0_17] : memref<8x128xf32, #tpu.memory_space<vmem>>, vector<8x128xf32>
      tpu.vector_store %arg6[%c0_16, %c0_17], %31 {strides = array<i32>} : memref<8x128xf32, #tpu.memory_space<vmem>>, vector<8x128xf32>,
      %c0_18 = arith.constant 0 : index
      %c0_19 = arith.constant 0 : index
      %33 = vector.load %arg7[%c0_18, %c0_19] : memref<8x128xi32, #tpu.memory_space<vmem>>, vector<8x128xi32>
      %34 = vector.shape_cast %27 : vector<16x128xi32> to vector<2x8x128xi32>
      %cst_20 = arith.constant dense<0> : vector<8x128xi32>
      %35 = vector.multi_reduction <add>, %34, %cst_20 [0] : vector<2x8x128xi32> to vector<8x128xi32>
      %36 = arith.addi %33, %35 : vector<8x128xi32>
      %c0_21 = arith.constant 0 : index
      %c0_22 = arith.constant 0 : index
      %37 = vector.load %arg7[%c0_21, %c0_22] : memref<8x128xi32, #tpu.memory_space<vmem>>, vector<8x128xi32>
      tpu.vector_store %arg7[%c0_21, %c0_22], %36 {strides = array<i32>} : memref<8x128xi32, #tpu.memory_space<vmem>>, vector<8x128xi32>,
    } else {
    }
    %c1_i32_6 = arith.constant 1 : i32
    %10 = arith.cmpi sge, %6, %c1_i32_6 : i32
    %11 = arith.extui %10 : i1 to i32
    %c0_i32_7 = arith.constant 0 : i32
    %12 = arith.cmpi ne, %11, %c0_i32_7 : i32
    scf.if %12 {
      %c16_i32 = arith.constant 16 : i32
      %16 = arith.muli %6, %c16_i32 : i32
      %17 = tpu.iota {dimensions = array<i32: 0>} : vector<16x128xi32>
      %18 = vector.broadcast %16 : i32 to vector<16x128xi32>
      %19 = arith.addi %18, %17 : vector<16x128xi32>
      %c16_i32_10 = arith.constant 16 : i32
      %20 = vector.broadcast %c16_i32_10 : i32 to vector<16x128xi32>
      %21 = arith.cmpi slt, %19, %20 : vector<16x128xi32>
      %cst = arith.constant 0.000000e+00 : f32
      %22 = vector.broadcast %cst : f32 to vector<16x128xf32>
      %23 = arith.cmpf ogt, %4, %22 : vector<16x128xf32>
      %24 = arith.andi %21, %23 : vector<16x128xi1>
      %cst_11 = arith.constant 1.000000e+00 : f32
      %25 = vector.broadcast %cst_11 : f32 to vector<16x128xf32>
      %26 = arith.select %24, %4, %25 : vector<16x128xi1>, vector<16x128xf32>
      %cst_12 = arith.constant 1.000000e+00 : f32
      %27 = vector.broadcast %cst_12 : f32 to vector<16x128xf32>
      %28 = arith.divf %27, %26 : vector<16x128xf32>
      %29 = arith.subf %3, %28 : vector<16x128xf32>
      %30 = math.absf %29 : vector<16x128xf32>
      %31 = arith.mulf %30, %30 : vector<16x128xf32>
      %cst_13 = arith.constant 0.000000e+00 : f32
      %32 = vector.broadcast %cst_13 : f32 to vector<16x128xf32>
      %33 = arith.select %24, %31, %32 : vector<16x128xi1>, vector<16x128xf32>
      %34 = arith.extui %24 : vector<16x128xi1> to vector<16x128xi32>
      %c0_14 = arith.constant 0 : index
      %c0_15 = arith.constant 0 : index
      %35 = vector.load %arg6[%c0_14, %c0_15] : memref<8x128xf32, #tpu.memory_space<vmem>>, vector<8x128xf32>
      %36 = vector.shape_cast %33 : vector<16x128xf32> to vector<2x8x128xf32>
      %cst_16 = arith.constant dense<0.000000e+00> : vector<8x128xf32>
      %37 = vector.multi_reduction <add>, %36, %cst_16 [0] : vector<2x8x128xf32> to vector<8x128xf32>
      %38 = arith.addf %35, %37 : vector<8x128xf32>
      %c0_17 = arith.constant 0 : index
      %c0_18 = arith.constant 0 : index
      %39 = vector.load %arg6[%c0_17, %c0_18] : memref<8x128xf32, #tpu.memory_space<vmem>>, vector<8x128xf32>
      tpu.vector_store %arg6[%c0_17, %c0_18], %38 {strides = array<i32>} : memref<8x128xf32, #tpu.memory_space<vmem>>, vector<8x128xf32>,
      %c0_19 = arith.constant 0 : index
      %c0_20 = arith.constant 0 : index
      %40 = vector.load %arg7[%c0_19, %c0_20] : memref<8x128xi32, #tpu.memory_space<vmem>>, vector<8x128xi32>
      %41 = vector.shape_cast %34 : vector<16x128xi32> to vector<2x8x128xi32>
      %cst_21 = arith.constant dense<0> : vector<8x128xi32>
      %42 = vector.multi_reduction <add>, %41, %cst_21 [0] : vector<2x8x128xi32> to vector<8x128xi32>
      %43 = arith.addi %40, %42 : vector<8x128xi32>
      %c0_22 = arith.constant 0 : index
      %c0_23 = arith.constant 0 : index
      %44 = vector.load %arg7[%c0_22, %c0_23] : memref<8x128xi32, #tpu.memory_space<vmem>>, vector<8x128xi32>
      tpu.vector_store %arg7[%c0_22, %c0_23], %43 {strides = array<i32>} : memref<8x128xi32, #tpu.memory_space<vmem>>, vector<8x128xi32>,
    } else {
    }
    %c0_i32_8 = arith.constant 0 : i32
    %13 = arith.cmpi eq, %arg1, %c0_i32_8 : i32
    %14 = arith.extui %13 : i1 to i32
    %c0_i32_9 = arith.constant 0 : i32
    %15 = arith.cmpi ne, %14, %c0_i32_9 : i32
    scf.if %15 {
      %cst = arith.constant 0.000000e+00 : f32
      %16 = vector.broadcast %cst : f32 to vector<1x1x1xf32>
      %c0_10 = arith.constant 0 : index
      %c0_11 = arith.constant 0 : index
      %17 = vector.load %arg6[%c0_10, %c0_11] : memref<8x128xf32, #tpu.memory_space<vmem>>, vector<8x128xf32>
      %18 = vector.shape_cast %17 : vector<8x128xf32> to vector<1x8x128xf32>
      %cst_12 = arith.constant dense<0.000000e+00> : vector<1xf32>
      %19 = vector.multi_reduction <add>, %18, %cst_12 [1, 2] : vector<1x8x128xf32> to vector<1xf32>
      %20 = vector.shape_cast %19 : vector<1xf32> to vector<1x1x1xf32>
      %21 = vector.extract %20[0, 0, 0] : f32 from vector<1x1x1xf32>
      %22 = vector.broadcast %21 : f32 to vector<1x1x1xf32>
      %23 = arith.addf %16, %22 : vector<1x1x1xf32>
      %c0_13 = arith.constant 0 : index
      %c0_14 = arith.constant 0 : index
      %c0_15 = arith.constant 0 : index
      %24 = vector.load %arg4[%c0_13, %c0_14, %c0_15] : memref<1x1x1xf32, #tpu.memory_space<vmem>>, vector<1x1x1xf32>
      tpu.vector_store %arg4[%c0_13, %c0_14, %c0_15], %23 {strides = array<i32>} : memref<1x1x1xf32, #tpu.memory_space<vmem>>, vector<1x1x1xf32>,
      %c0_i32_16 = arith.constant 0 : i32
      %25 = vector.broadcast %c0_i32_16 : i32 to vector<1x1x1xi32>
      %c0_17 = arith.constant 0 : index
      %c0_18 = arith.constant 0 : index
      %26 = vector.load %arg7[%c0_17, %c0_18] : memref<8x128xi32, #tpu.memory_space<vmem>>, vector<8x128xi32>
      %27 = vector.shape_cast %26 : vector<8x128xi32> to vector<1x8x128xi32>
      %cst_19 = arith.constant dense<0> : vector<1xi32>
      %28 = vector.multi_reduction <add>, %27, %cst_19 [1, 2] : vector<1x8x128xi32> to vector<1xi32>
      %29 = vector.shape_cast %28 : vector<1xi32> to vector<1x1x1xi32>
      %30 = vector.extract %29[0, 0, 0] : i32 from vector<1x1x1xi32>
      %31 = vector.broadcast %30 : i32 to vector<1x1x1xi32>
      %32 = arith.addi %25, %31 : vector<1x1x1xi32>
      %c0_20 = arith.constant 0 : index
      %c0_21 = arith.constant 0 : index
      %c0_22 = arith.constant 0 : index
      %33 = vector.load %arg5[%c0_20, %c0_21, %c0_22] : memref<1x1x1xi32, #tpu.memory_space<vmem>>, vector<1x1x1xi32>
      tpu.vector_store %arg5[%c0_20, %c0_21, %c0_22], %32 {strides = array<i32>} : memref<1x1x1xi32, #tpu.memory_space<vmem>>, vector<1x1x1xi32>,
    } else {
    }
    return
  }
  func.func @transform_0(%arg0: i32, %arg1: i32) -> (i32, i32) {
    %c1_i32 = arith.constant 1 : i32
    %0 = arith.muli %arg0, %c1_i32 : i32
    %1 = arith.addi %0, %arg1 : i32
    %c0_i32 = arith.constant 0 : i32
    %2 = arith.minsi %1, %c0_i32 : i32
    %c0_i32_0 = arith.constant 0 : i32
    %c0_i32_1 = arith.constant 0 : i32
    return %2, %c0_i32_0 : i32, i32
  }
  func.func @transform_1(%arg0: i32, %arg1: i32) -> (i32, i32) {
    %c1_i32 = arith.constant 1 : i32
    %0 = arith.muli %arg0, %c1_i32 : i32
    %1 = arith.addi %0, %arg1 : i32
    %c0_i32 = arith.constant 0 : i32
    %2 = arith.minsi %1, %c0_i32 : i32
    %c0_i32_0 = arith.constant 0 : i32
    %c0_i32_1 = arith.constant 0 : i32
    return %2, %c0_i32_0 : i32, i32
  }
  func.func @transform_2(%arg0: i32, %arg1: i32) -> (i32, i32, i32) {
    %c0_i32 = arith.constant 0 : i32
    %c0_i32_0 = arith.constant 0 : i32
    %c0_i32_1 = arith.constant 0 : i32
    return %arg0, %c0_i32, %c0_i32_0 : i32, i32, i32
  }
  func.func @transform_3(%arg0: i32, %arg1: i32) -> (i32, i32, i32) {
    %c0_i32 = arith.constant 0 : i32
    %c0_i32_0 = arith.constant 0 : i32
    %c0_i32_1 = arith.constant 0 : i32
    return %arg0, %c0_i32, %c0_i32_0 : i32, i32, i32
  }
}

</mosaic_0001>

<bundles_post_ra>
// kernel: tpu_custom_call.1
= control target key start
LH: loop header
LB: loop body
LE: loop exit
PB: predicated region body
PF: predicated region fallthrough
CT: control target
= control target key end

     0   :  { %9 = vsyncpa [#allocation5], 0  ;;  %s929_s0 = inlined_call_operand.hbm [shape: f32[16,128], index: 0, kind: input, shape index: {}]   ;;  %s930_s1 = inlined_call_operand.hbm [shape: f32[16,128], index: 1, kind: input, shape index: {}]   ;;  %s931_s2 = inlined_call_operand.vmem [shape: f32[2,1,1], index: 2, kind: output, shape index: {0}]   ;;  %s932_s3 = inlined_call_operand.vmem [shape: s32[2,1,1], index: 3, kind: output, shape index: {1}]  }
   0x1   :  { %11 = vsyncpa [#allocation5 + $0x1], 0 }
   0x2   :  { %12 = vsyncpa [#allocation7], 0 }
   0x3   :  { %14 = vsyncpa [#allocation7 + $0x1], 0  ;;  %s749_s12 = smov 0   ;;  %s751_s13 = smov 0  }
   0x4   :  { %s753_s14 = smov 0   ;;  %s755_s15 = smov 0  }
   0x5   :  { %s757_s16 = smov 0  }
   0x6 LB: > { %s510_s17 = sadd.s32 4294967295, %s719_s16   ;;  %s32_s18 = sadd.s32 1, %s715_s15  ;;  %s719_s16 = sphi %s757_s16, %s20_s16   ;;  %s715_s15 = sphi %s755_s15, %s945_s15   ;;  %s711_s14 = sphi %s753_s14, %s944_s14   ;;  %s707_s13 = sphi %s751_s13, %s919_s13   ;;  %s703_s12 = sphi %s749_s12, %s943_s12  }
   0x7   : > { %p34_p0 = scmp.ge.s32.totalorder %s32_s18, 2  ;;  %p700_p1 = scmp.ne.s32.totalorder %s707_s13, 0 }
   0x8   : > { %p53_p2 = scmp.eq.s32.totalorder %s719_s16, 0  ;;  %p58_p3 = scmp.ne.s32.totalorder %s707_s13, %s703_s12 }
   0x9   : > { %s947_s18 = smov (%p34_p0, %s32_s18), 0  ;;  %p59_p4 = scmp.eq.s32.totalorder %s510_s17, 0 }
   0xa   : > { %p54_p5 = por %p700_p1, %p53_p2  ;;  %p545_p7 = scmp.lt.s32.totalorder %s719_s16, 2 }
   0xb   : > { %p779_p6 = por %p59_p4, %p58_p3  ;;  %s721_s20 = smov [#allocation4]  }
   0xc   : > { %s180_s21 = sshll.u32 %s721_s20, 4  ;;  %p784_p8 = pnand %p545_p7, %p54_p5  ;;  %s181_s21 = int_to_ptr.vmem [resolvable:$true] %s180_s21 }
   0xd   : > { %s934_s19 = scalar_select %p779_p6, 1, 0 }
   0xe   : > { %s608_s25 = scalar_lea.hbm %s929_s0, 256  ;;  %p610_p10 = pneg %p784_p8 }
   0xf   : > { %p609_p9 = scmp.ne.s32.totalorder %s929_s0, %s608_s25  ;;  %p615_p13 = scmp.lt.u32.totalorder %s608_s25, %s608_s25 }
  0x10   : > { %p617_p0 = scmp.lt.u32.totalorder %s608_s25, %s929_s0 }
  0x11   : > { %p611_p11 = pnand %p610_p10, %p609_p9 }
  0x12   : > { %p618_p1 = por %p617_p0, %p615_p13 }
  0x13   : > { %p612_p12 = pneg %p611_p11 }
  0x15   : > { %p619_p2 = pnand %p618_p1, %p612_p12 }
  0x17   : > { %622 = shalt.err (!%p619_p2)
}
  0x18   : > { %s623_s30 = scalar_lea.vmem %s181_s21, 256  ;;  %s630_s4 = scalar_lea.vmem %s181_s21, 512 }
  0x19   : > { %p624_p3 = scmp.ne.s32.totalorder %s181_s21, %s623_s30  ;;  %p631_p7 = scmp.lt.s32.totalorder %s181_s21, %s181_s21 }
  0x1a   : > { %p632_p6 = scmp.lt.s32.totalorder %s630_s4, %s623_s30 }
  0x1b   : > { %p626_p4 = pnand %p624_p3, %p610_p10 }
  0x1c   : > { %p633_p9 = por %p632_p6, %p631_p7 }
  0x1d   : > { %p627_p5 = pneg %p626_p4 }
  0x1f   : > { %p634_p11 = pnand %p633_p9, %p627_p5 }
  0x21   : > { %637 = shalt.err (!%p634_p11)
}
  0x22   : > { %s722_s5 = smov 128   ;;  %s723_s6 = smov 8  }
  0x23   : > { %541 = dma.hbm_to_vmem [thread:$0]  (!%p784_p8), %s929_s0, 256, %s181_s21, [#allocation5], %s722_s5, %s722_s5, %s723_s6  }
  0x24   : > { %p520_p12 = scmp.ge.s32.totalorder %s719_s16, 1  ;;  %p212_p13 = scmp.lt.s32.totalorder %s719_s16, 3 }
  0x25   : > { %s724_s10 = smov [#allocation6]   ;;  %s638_s20 = scalar_lea.hbm %s930_s1, 256 }
  0x26   : > { %p815_p0 = pnand %p520_p12, %p212_p13  ;;  %s204_s11 = sshll.u32 %s724_s10, 4  ;;  %s205_s11 = int_to_ptr.vmem [resolvable:$true] %s204_s11 }
  0x27   : > { %p639_p6 = scmp.ne.s32.totalorder %s930_s1, %s638_s20  ;;  %p645_p3 = scmp.lt.u32.totalorder %s638_s20, %s638_s20 }
  0x28   : > { %s936_s9 = scalar_select %p815_p0, 1, 0 }
  0x29   : > { %p641_p1 = pnand %p639_p6, %p610_p10  ;;  %p647_p4 = scmp.lt.u32.totalorder %s638_s20, %s930_s1 }
  0x2b   : > { %p642_p2 = pneg %p641_p1  ;;  %p648_p5 = por %p647_p4, %p645_p3 }
  0x2d   : > { %p649_p7 = pnand %p648_p5, %p642_p2 }
  0x2f   : > { %652 = shalt.err (!%p649_p7)
}
  0x30   : > { %s653_s26 = scalar_lea.vmem %s205_s11, 256  ;;  %s660_s27 = scalar_lea.vmem %s205_s11, 512 }
  0x31   : > { %p654_p9 = scmp.ne.s32.totalorder %s205_s11, %s653_s26  ;;  %p661_p13 = scmp.lt.s32.totalorder %s205_s11, %s205_s11 }
  0x32   : > { %p662_p0 = scmp.lt.s32.totalorder %s660_s27, %s653_s26 }
  0x33   : > { %p656_p11 = pnand %p654_p9, %p610_p10 }
  0x34   : > { %p663_p6 = por %p662_p0, %p661_p13 }
  0x35   : > { %p657_p12 = pneg %p656_p11 }
  0x37   : > { %p664_p1 = pnand %p663_p6, %p657_p12 }
  0x39   : > { %667 = shalt.err (!%p664_p1)
}
  0x3a   : > { %544 = dma.hbm_to_vmem [thread:$0]  (!%p784_p8), %s930_s1, 256, %s205_s11, [#allocation7], %s722_s5, %s722_s5, %s723_s6  }
  0x3b   : > { %p937_p2 = scmp.ne.s32.totalorder %s936_s9, 0 }
  0x3c   : > { %s218_s30 = sand.u32 (!%p937_p2), 1, %s707_s13   ;;  %p938_p10 = scmp.ne.s32.totalorder (!%p937_p2), %s934_s19, 0 }
  0x3d   : > { %216 = sbr.rel (%p937_p2) target bundleno = 353 (0x161), region = 28  ;;  %s521_s4 = sshll.u32 (!%p937_p2), %s218_s30, 4 }
  0x3e   : > { %s219_s7 = scalar_lea.sflag (!%p937_p2), [#allocation5], %s218_s30  ;;  %s222_s8 = scalar_lea.vmem (!%p937_p2), [#allocation4], %s521_s4 }
  0x44   : > { %693 = dma.done.wait (%p938_p10), %s219_s7, 256  }
  0x45   : > { %695 = vsyncadd (%p938_p10), %s219_s7, 4294967040  ;;  %s228_s22 = scalar_lea.sflag [#allocation7], %s218_s30  ;;  %s231_s10 = scalar_lea.vmem [#allocation6], %s521_s4 }
  0x46   : > { %697 = dma.done.wait (%p938_p10), %s228_s22, 256  }
  0x47   : > { %699 = vsyncadd (%p938_p10), %s228_s22, 4294967040  ;;  %p268_p8 = scmp.lt.s32.totalorder %s711_s14, 1  ;;  %v725_v0 = vmov 0.0   ;;  %v726_v1 = vmov 0   ;;  %v867_v2 = vld [vmem:[%s222_s8] sm:$0xff]  ;;  %v869_v3 = vld [vmem:[%s222_s8 + $0x8] sm:$0xff] }
  0x48   : > { %278 = vst [vmem:[#allocation2] sm:$0xff] %v725_v0  ;;  %279 = vst [vmem:[#allocation3] sm:$0xff] %v726_v1  ;;  %v282_v4 = vld [vmem:[%s231_s10] sm:$0xff]  ;;  %v283_v5 = vld [vmem:[%s231_s10 + $0x8] sm:$0xff]  ;;  %p523_p0 = scmp.ge.s32.totalorder %s711_s14, 1 }
  0x49   : > { %s857_s5 = scalar_select %p268_p8, %s711_s14, 1 }
  0x4a   : > { %288 = sbr.rel (%p523_p0) target bundleno = 100 (0x64), region = 44  ;;  %vm289_vm0 = vcmp.gt.f32.partialorder (!%p523_p0), %v282_v4, 0.0  ;;  %vm290_vm1 = vcmp.gt.f32.partialorder (!%p523_p0), %v283_v5, 0.0  ;;  %v727_v8 = vmov (!%p523_p0), 0  }
  0x4b   : > { %s270_s11 = scalar_lea.vmem %s931_s2, %s857_s5  ;;  %s273_s17 = scalar_lea.vmem %s932_s3, %s857_s5  ;;  %v291_v6 = vsel (!%p523_p0), %vm289_vm0, %v282_v4, 1.0  ;;  %v292_v7 = vsel (!%p523_p0), %vm290_vm1, %v283_v5, 1.0  ;;  %v305_v9 = vsel (!%p523_p0), %vm289_vm0, 1, %v727_v8  ;;  %v306_v10 = vsel (!%p523_p0), %vm290_vm1, 1, %v727_v8 }
  0x4c   : > { %600 = vrcp.f32 (!%p523_p0), %v291_v6  ;;  %v312_v12 = vadd.s32 (!%p523_p0), %v306_v10, %v305_v9 }
  0x4d   : > { %602 = vrcp.f32 (!%p523_p0), %v292_v7 }
  0x4f   : > { %v311_v11 = vld [vmem:[#allocation3] sm:$0xff] (!%p523_p0)  ;;  %v307_v24 = vld [vmem:[#allocation2] sm:$0xff] (!%p523_p0) }
  0x50   : > { %v313_v13 = vadd.s32 (!%p523_p0), %v312_v12, %v311_v11 }
  0x52   : > { %314 = vst [vmem:[#allocation3] sm:$0xff] %v313_v13 }
  0x56   : > { %v601_v14 = vpop.eup %600 }
  0x57   : > { %v603_v15 = vpop.eup %602  ;;  %v297_v16 = vsub.f32 %v867_v2, %v601_v14 }
  0x58   : > { %v298_v17 = vsub.f32 %v869_v3, %v603_v15 }
  0x59   : > { %v299_v18 = vand.u32 2147483647, %v297_v16 }
  0x5a   : > { %v300_v19 = vand.u32 2147483647, %v298_v17 }
  0x5b   : > { %v301_v20 = vmul.f32 %v299_v18, %v299_v18 }
  0x5c   : > { %v302_v21 = vmul.f32 %v300_v19, %v300_v19 }
  0x5d   : > { %v303_v22 = vsel %vm289_vm0, %v301_v20, 0.0 }
  0x5e   : > { %v304_v23 = vsel %vm290_vm1, %v302_v21, 0.0 }
  0x5f   : > { %v308_v25 = vadd.f32 %v304_v23, %v303_v22 }
  0x61   : > { %v309_v26 = vadd.f32 %v308_v25, %v307_v24 }
  0x63   : > { %310 = vst [vmem:[#allocation2] sm:$0xff] %v309_v26 }
  0x64 PF: > { %318 = sbr.rel (%p268_p8) target bundleno = 134 (0x86), region = 48  ;;  %s525_s20 = sshll.u32 (!%p268_p8), %s711_s14, 4  ;;  %v320_v27 = vlaneseq (!%p268_p8)  ;;  %vm328_vm2 = vcmp.gt.f32.partialorder (!%p268_p8), %v282_v4, 0.0  ;;  %vm329_vm4 = vcmp.gt.f32.partialorder (!%p268_p8), %v283_v5, 0.0  ;;  %v728_v35 = vmov (!%p268_p8), 0   ;;  %v352_v40 = vld [vmem:[#allocation3] sm:$0xff] (!%p268_p8) }
  0x65   : > { %v323_v28 = vstv (!%p268_p8), %s525_s20 }
  0x66   : > { %v321_v29 = vshrl.u32 (!%p268_p8), %v320_v27, 7 }
  0x68   : > { %v322_v30 = vadd.s32 (!%p268_p8), 8, %v321_v29  ;;  %v324_v31 = vadd.s32 (!%p268_p8), %v323_v28, %v321_v29 }
  0x6a   : > { %v325_v32 = vadd.s32 (!%p268_p8), %v323_v28, %v322_v30  ;;  %vm326_vm3 = vcmp.lt.s32.totalorder (!%p268_p8), %v324_v31, 16  ;;  %v348_v53 = vld [vmem:[#allocation2] sm:$0xff] (!%p268_p8) }
  0x6b   : > { %vm883_vm5 = vmand %vm326_vm3, %vm328_vm2 }
  0x6c   : > { %vm327_vm6 = vcmp.lt.s32.totalorder %v325_v32, 16  ;;  %v332_v34 = vsel %vm883_vm5, %v282_v4, 1.0  ;;  %v346_v36 = vsel %vm883_vm5, 1, %v728_v35 }
  0x6d   : > { %vm891_vm7 = vmand %vm327_vm6, %vm329_vm4  ;;  %604 = vrcp.f32 %v332_v34 }
  0x6e   : > { %v333_v38 = vsel %vm891_vm7, %v283_v5, 1.0  ;;  %v347_v39 = vsel %vm891_vm7, 1, %v728_v35 }
  0x6f   : > { %606 = vrcp.f32 %v333_v38  ;;  %v353_v41 = vadd.s32 %v347_v39, %v346_v36 }
  0x71   : > { %v354_v42 = vadd.s32 %v353_v41, %v352_v40 }
  0x73   : > { %355 = vst [vmem:[#allocation3] sm:$0xff] %v354_v42 }
  0x77   : > { %v605_v43 = vpop.eup %604 }
  0x78   : > { %v338_v44 = vsub.f32 %v867_v2, %v605_v43 }
  0x79   : > { %v607_v45 = vpop.eup %606 }
  0x7a   : > { %v339_v46 = vsub.f32 %v869_v3, %v607_v45  ;;  %v340_v47 = vand.u32 2147483647, %v338_v44 }
  0x7c   : > { %v341_v48 = vand.u32 2147483647, %v339_v46  ;;  %v342_v49 = vmul.f32 %v340_v47, %v340_v47 }
  0x7e   : > { %v343_v50 = vmul.f32 %v341_v48, %v341_v48  ;;  %v344_v51 = vsel %vm883_vm5, %v342_v49, 0.0 }
  0x80   : > { %v345_v52 = vsel %vm891_vm7, %v343_v50, 0.0 }
  0x81   : > { %v349_v54 = vadd.f32 %v345_v52, %v344_v51 }
  0x83   : > { %v350_v55 = vadd.f32 %v349_v54, %v348_v53 }
  0x85   : > { %351 = vst [vmem:[#allocation2] sm:$0xff] %v350_v55 }
  0x86 PF: > { %v373_v56 = vld [vmem:[#allocation3] sm:$0xff]  ;;  %vm371_vm8 = vcmask 0  }
  0x87   : > { %v375_v58 = vshrl.u32 %v373_v56, 16  ;;  %v374_v59 = vand.u32 65535, %v373_v56 }
  0x89   : > { %v377_v60 = vcvt.s32.f32 %v375_v58  ;;  %v376_v61 = vcvt.s32.f32 %v374_v59 }
  0x8b   : > { %380 = vadd.xlane.f32.xlu0 %v377_v60 }
  0x8c   : > { %v359_v57 = vld [vmem:[#allocation2] sm:$0xff] }
  0x8d   : > { %360 = vadd.xlane.f32.xlu1 %v359_v57 }
  0x8f   : > { %378 = vadd.xlane.f32.xlu0 %v376_v61 }
 0x118   : > { %v381_v1 = vpop.xlane.xlu0 %380 }
 0x119   : > { %v383_v2 = vcvt.f32.s32 %v381_v1 }
 0x11a   : > { %v361_v62 = vpop.xlane.xlu1 %360 }
 0x11b   : > { %v362_v63 = vrot.slane %v361_v62, 4  ;;  %v384_v6 = vshll.u32 %v383_v2, 16 }
 0x11c   : > { %v379_v5 = vpop.xlane.xlu0 %378 }
 0x11d   : > { %v363_v0 = vadd.f32 %v362_v63, %v361_v62  ;;  %v382_v7 = vcvt.f32.s32 %v379_v5 }
 0x11f   : > { %v364_v3 = vrot.slane %v363_v0, 2  ;;  %v385_v9 = vadd.s32 %v384_v6, %v382_v7 }
 0x121   : > { %v365_v4 = vadd.f32 %v364_v3, %v363_v0  ;;  %v386_v11 = vrot.slane %v385_v9, 4 }
 0x123   : > { %v366_v8 = vrot.slane %v365_v4, 1  ;;  %v387_v12 = vadd.s32 %v386_v11, %v385_v9 }
 0x125   : > { %v367_v10 = vadd.f32 %v366_v8, %v365_v4  ;;  %v388_v13 = vrot.slane %v387_v12, 2 }
 0x127   : > { %530 = vpush %v367_v10  ;;  %v389_v14 = vadd.s32 %v388_v13, %v387_v12 }
 0x129   : > { %v390_v15 = vrot.slane %v389_v14, 1 }
 0x12b   : > { %v391_v16 = vadd.s32 %v390_v15, %v389_v14 }
 0x12d   : > { %532 = vpush %v391_v16 }
 0x158   : > { %s531_s14 = spop %530 }
 0x159   : > { %v369_v17 = vstv %s531_s14 }
 0x15a   : > { %372 = vst.msk [vmem:[%s270_s11] sm:$0x1] %vm371_vm8, %v369_v17 }
 0x15e   : > { %s533_s21 = spop %532 }
 0x15f   : > { %v393_v18 = vstv %s533_s21 }
 0x160   : > { %394 = vst.msk [vmem:[%s273_s17] sm:$0x1] %vm371_vm8, %v393_v18 }
 0x161 PF: > { %s20_s16 = sadd.s32 1, %s719_s16   ;;  %s943_s12 = smov %s707_s13 }
 0x162   : > { %p17_p3 = scmp.ge.s32.totalorder %s20_s16, 4   ;;  %s919_s13 = smov 0  }
 0x163   : > { %s944_s14 = smov %s715_s15  ;;  %s945_s15 = smov %s947_s18 }
 0x164   :  { %19 = sbr.rel (!%p17_p3) target bundleno = 6 (0x6), region = 109 }
 0x16b   :  { %424 = vsyncpa [#allocation5], 1 }
 0x16c   :  { %426 = vsyncpa [#allocation5 + $0x1], 1 }
 0x16d   :  { %427 = vsyncpa [#allocation7], 1 }
 0x16e   :  { %429 = vsyncpa [#allocation7 + $0x1], 1 }

</bundles_post_ra>
